<compile_context>
chip_gen: v5e
topology: v5e:2x2
jax: 0.10.0
libtpu: 0.0.40
codegen_flags: <defaults>
</compile_context>

<pallas_src>
import math

import jax
import jax.numpy as jnp
from jax.experimental import pallas as pl
from jax.experimental.pallas import tpu as pltpu


def _round_up(x, m):
    return (x + m - 1) // m * m


def _rrr_kernel(x_ref, w_ref, b_ref, e_ref, out_ref, lg_ref, acc_ref):
    p = pl.program_id(1)          # phase: 0 = forward (logits), 1 = backward (penalty)
    d = pl.program_id(2)          # D-tile index (reduction axis, innermost)
    n_d = pl.num_programs(2)

    b_tile, d_tile = x_ref.shape
    n_classes = w_ref.shape[0]    # W is resident transposed: (C, D_pad)

    # Per-B-tile init (first step of phase 0).
    @pl.when(jnp.logical_and(p == 0, d == 0))
    def _():
        lg_ref[...] = jnp.zeros_like(lg_ref)
        acc_ref[...] = jnp.zeros_like(acc_ref)

    d_start = pl.multiple_of(d * d_tile, d_tile)

    @pl.when(p == 0)
    def _():
        # Lane-dense W slice (C, DT) loaded inside the branch (short live range).
        w_tile = w_ref[:, pl.ds(d_start, d_tile)]
        x = x_ref[...].astype(jnp.float32)                        # (BT, DT)
        # logits += x @ W_tile^T  (contract last dims; W never transposed in-kernel)
        lg_ref[...] += jax.lax.dot_general(
            x, w_tile,
            dimension_numbers=(((1,), (1,)), ((), ())),
            preferred_element_type=jnp.float32)                   # (BT, C)

        @pl.when(d == n_d - 1)
        def _():
            # Finalize forward: stable softmax and the closed-form cotangent
            # of sum(log_softmax) w.r.t. logits:  1 - C * softmax.
            logits = lg_ref[...] + b_ref[...]                     # (BT, C)
            m = jnp.max(logits, axis=-1, keepdims=True)
            ex = jnp.exp(logits - m)
            sm = ex / jnp.sum(ex, axis=-1, keepdims=True)
            lg_ref[...] = 1.0 - jnp.float32(n_classes) * sm       # grad wrt logits

    @pl.when(p == 1)
    def _():
        # Backward: grad_x tile = grad_logits @ W_tile, lane-dense MXU RHS.
        # (On v5e with tiny C this K=C dot could be a VPU broadcast-FMA instead;
        #  kept on the MXU since the kernel is mem-bound.)
        w_tile = w_ref[:, pl.ds(d_start, d_tile)]                 # (C, DT)
        gx = jnp.dot(lg_ref[...], w_tile,
                     preferred_element_type=jnp.float32)          # (BT, DT)
        e = e_ref[...].astype(jnp.float32)                        # (BT, DT)
        a = e * gx
        a2 = a * a
        # Fold the DT lane-chunks onto 128 lanes with pure VPU adds; the
        # cross-lane/sublane reduce is deferred to the last D step.
        acc = acc_ref[...]                                        # (BT, 128)
        for c in range(d_tile // 128):
            acc = acc + a2[:, c * 128:(c + 1) * 128]
        acc_ref[...] = acc

        @pl.when(d == n_d - 1)
        def _():
            # (BT,128) -> (8,128): sum the sublane groups (layout-preserving
            # reshape), single lane-dense store per B tile.
            folded = jnp.sum(acc_ref[...].reshape(b_tile // 8, 8, 128), axis=0)
            out_ref[...] = folded.reshape(1, 8, 128)


def rrr_loss_pallas(X, E_pnlt, W, b, *,
                    normalization_rate, regularization_rate, rr_clipping=None,
                    mask=None, b_tile=None, d_tile=None):
    """Right-Reason loss for the linear model logits = flatten(X) @ W + b.

    X, E_pnlt: (B, C, H, W) NCHW, any float dtype (bf16 recommended — the
    kernel casts per-tile and accumulates in f32). Returns a scalar f32.
    `mask`, if given, is a non-negative per-sample (B,) or full-shape weight.
    """
    B = X.shape[0]
    D = math.prod(X.shape[1:])
    C = W.shape[-1]

    x_flat = X.reshape(B, D)          # keep native dtype (no wrapper f32 cast)
    e_flat = E_pnlt.reshape(B, D)

    if mask is not None:
        # sum(mask * (E*gx)^2) == sum((sqrt(mask)*E*gx)^2) for mask >= 0.
        m = jnp.asarray(mask, jnp.float32).reshape(B, -1)
        e_flat = (e_flat.astype(jnp.float32) * jnp.sqrt(m)).astype(e_flat.dtype)

    # --- Tile heuristics (mem-bound: big tiles; keep >=2 B blocks for v7x) ---
    if b_tile is None:
        if B >= 512:
            b_tile = 256
        elif B >= 32:
            b_tile = min(256, _round_up((B + 1) // 2, 16))
        else:
            b_tile = _round_up(B, 16)
    b_tile = _round_up(b_tile, 16)

    in_itemsize = jnp.dtype(x_flat.dtype).itemsize
    if d_tile is None:
        # Target ~1 MiB of input data per tile per step.
        target = max(512, (1 << 20) // max(1, b_tile * in_itemsize))
        d_tile = min(target, _round_up(D, 128))
    d_tile = _round_up(d_tile, 128)

    B_pad = _round_up(B, b_tile)
    D_pad = _round_up(D, d_tile)
    if (B_pad, D_pad) != (B, D):
        # Zero padding is exact: padded W rows contribute 0 to logits/grad and
        # padded E entries zero out any padded-row/col contribution to the sum.
        x_flat = jnp.pad(x_flat, ((0, B_pad - B), (0, D_pad - D)))
        e_flat = jnp.pad(e_flat, ((0, B_pad - B), (0, D_pad - D)))

    # Lane-dense resident weights: (C, D_pad) f32 (~16x less VMEM than (D_pad, C)).
    w_t = W.astype(jnp.float32).T
    if D_pad != D:
        w_t = jnp.pad(w_t, ((0, 0), (0, D_pad - D)))
    bias = b.reshape(1, C).astype(jnp.float32)

    n_b = B_pad // b_tile
    n_d = D_pad // d_tile

    # VMEM budget: double-buffered X/E tiles + resident W/bias + scratch, with
    # headroom; capped at 48 MiB so it also fits v7x's 64 MiB physical VMEM.
    need = (2 * 2 * b_tile * d_tile * in_itemsize       # X + E, double-buffered
            + 2 * max(8, C) * D_pad * 4                 # resident W buffers
            + 2 * 8 * 128 * 4                           # bias (padded)
            + b_tile * 128 * 4                          # logits scratch (lane pad)
            + b_tile * 128 * 4                          # penalty accumulator
            + 2 * 8 * 128 * 4)                          # output block
    vmem_limit = int(min(max(int(need * 1.5) + (4 << 20), 16 << 20), 48 << 20))

    partials = pl.pallas_call(
        _rrr_kernel,
        out_shape=jax.ShapeDtypeStruct((n_b, 8, 128), jnp.float32),
        grid_spec=pltpu.PrefetchScalarGridSpec(
            num_scalar_prefetch=0,
            grid=(n_b, 2, n_d),            # (B tiles, phase, D reduction)
            in_specs=[
                # X: phase 0 walks the D tiles; phase 1 stays pinned on the LAST
                # block fetched -> no redundant re-DMA at the phase boundary.
                pl.BlockSpec((b_tile, d_tile),
                             lambda i, p, k: (i, k * (1 - p) + (n_d - 1) * p)),
                # W (C, D_pad): constant index map -> DMA'd once, resident.
                pl.BlockSpec((C, D_pad), lambda i, p, k: (0, 0)),
                # bias: resident.
                pl.BlockSpec((1, C), lambda i, p, k: (0, 0)),
                # E: phase 1 walks the D tiles; phase 0 pins block 0, which is a
                # free prefetch of phase 1's first tile.
                pl.BlockSpec((b_tile, d_tile), lambda i, p, k: (i, k * p)),
            ],
            out_specs=pl.BlockSpec((1, 8, 128), lambda i, p, k: (i, 0, 0)),
            scratch_shapes=[
                pltpu.VMEM((b_tile, C), jnp.float32),     # logits / grad_logits
                pltpu.VMEM((b_tile, 128), jnp.float32),   # lane-folded penalty acc
            ],
        ),
        compiler_params=pltpu.CompilerParams(
            dimension_semantics=("parallel", "arbitrary", "arbitrary"),
            vmem_limit_bytes=vmem_limit,
        ),
    )(x_flat, w_t, bias, e_flat)

    # Global epilogue (tiny): the whole output tensor holds per-lane partials,
    # so a plain sum is the total; scale and clip applied ONCE.
    rr = jnp.sum(partials)
    rr = rr * jnp.float32(normalization_rate) * jnp.float32(regularization_rate)
    if rr_clipping is not None:
        rr = jnp.minimum(rr, jnp.float32(rr_clipping))
    return rr


def _reference_loss(X, E_pnlt, W, b, *,
                    normalization_rate, regularization_rate, rr_clipping=None,
                    mask=None):
    """Pure-JAX reference using autodiff (mirrors the torch.autograd.grad path)."""
    B = X.shape[0]
    D = math.prod(X.shape[1:])
    x_flat = X.reshape(B, D).astype(jnp.float32)
    e_flat = E_pnlt.reshape(B, D).astype(jnp.float32)

    def f(xf):
        logits = xf @ W + b.reshape(1, -1)
        return jnp.sum(jax.nn.log_softmax(logits, axis=1))

    grad_x = jax.grad(f)(x_flat)
    a2 = (e_flat * grad_x) ** 2
    if mask is not None:
        a2 = a2 * jnp.asarray(mask, jnp.float32).reshape(B, -1)
    rr = jnp.sum(a2)
    rr = rr * normalization_rate * regularization_rate
    if rr_clipping is not None:
        rr = jnp.minimum(rr, rr_clipping)
    return rr


if __name__ == "__main__":
    key = jax.random.PRNGKey(0)
    kx, ke, kw, kb, km = jax.random.split(key, 5)

    # Small shapes consistent with an image-classification setup (NCHW).
    B, Cc, H, Wd = 2, 4, 16, 16
    num_classes = 8
    D = Cc * H * Wd                     # 1024

    X = jax.random.normal(kx, (B, Cc, H, Wd), dtype=jnp.float32)
    E_pnlt = jax.random.bernoulli(ke, 0.3, (B, Cc, H, Wd)).astype(jnp.float32)
    W = jax.random.normal(kw, (D, num_classes), dtype=jnp.float32) * 0.05
    b = jax.random.normal(kb, (num_classes,), dtype=jnp.float32) * 0.05

    # bf16 inputs halve HBM traffic on this bandwidth-bound kernel; math stays
    # f32 inside the kernel. E_pnlt is a 0/1 mask so bf16 is exact.
    X_bf = X.astype(jnp.bfloat16)
    E_bf = E_pnlt.astype(jnp.bfloat16)

    nr, rr_rate = 10.0, 5.0

    ref = jax.block_until_ready(_reference_loss(
        X_bf.astype(jnp.float32), E_bf.astype(jnp.float32), W, b,
        normalization_rate=nr, regularization_rate=rr_rate))

    # 1) Default tiles.
    loss = jax.block_until_ready(rrr_loss_pallas(
        X_bf, E_bf, W, b, normalization_rate=nr, regularization_rate=rr_rate))
    assert jnp.allclose(loss, ref, rtol=2e-2, atol=1e-3), (loss, ref)

    # 2) Explicit small tiles: multi-step D reduction + B padding exercised.
    loss2 = jax.block_until_ready(rrr_loss_pallas(
        X_bf, E_bf, W, b, normalization_rate=nr, regularization_rate=rr_rate,
        b_tile=16, d_tile=256))
    assert jnp.allclose(loss2, ref, rtol=2e-2, atol=1e-3), (loss2, ref)

    # 3) Multiple B tiles (the "parallel" axis has >1 block).
    B2 = 40
    X2 = jax.random.normal(kx, (B2, Cc, H, Wd), dtype=jnp.float32).astype(jnp.bfloat16)
    E2 = jax.random.bernoulli(ke, 0.3, (B2, Cc, H, Wd)).astype(jnp.bfloat16)
    ref2 = _reference_loss(X2.astype(jnp.float32), E2.astype(jnp.float32), W, b,
                           normalization_rate=nr, regularization_rate=rr_rate)
    loss3 = jax.block_until_ready(rrr_loss_pallas(
        X2, E2, W, b, normalization_rate=nr, regularization_rate=rr_rate))
    assert jnp.allclose(loss3, ref2, rtol=2e-2, atol=1e-3), (loss3, ref2)

    # 4) Clipping path (applied on the global sum only).
    clip = 1.0
    loss_c = jax.block_until_ready(rrr_loss_pallas(
        X_bf, E_bf, W, b, normalization_rate=nr, regularization_rate=rr_rate,
        rr_clipping=clip))
    assert jnp.allclose(loss_c, jnp.minimum(ref, jnp.float32(clip)),
                        rtol=2e-2, atol=1e-3), (loss_c,)

    # 5) Per-sample mask re-weighting path.
    mask = jax.random.uniform(km, (B,), minval=0.0, maxval=2.0)
    ref_m = _reference_loss(X_bf.astype(jnp.float32), E_bf.astype(jnp.float32), W, b,
                            normalization_rate=nr, regularization_rate=rr_rate,
                            mask=mask)
    loss_m = jax.block_until_ready(rrr_loss_pallas(
        X_bf, E_bf, W, b, normalization_rate=nr, regularization_rate=rr_rate,
        mask=mask))
    assert jnp.allclose(loss_m, ref_m, rtol=2e-2, atol=1e-3), (loss_m, ref_m)

    print("KERNEL_OK")
</pallas_src>

<mosaic_0001>
module attributes {stable_mosaic.version = 11 : i64} {
  func.func @_rrr_kernel(%arg0: i32, %arg1: i32, %arg2: i32, %arg3: memref<16x1024xbf16, #tpu.memory_space<vmem>>, %arg4: memref<8x1024xf32, #tpu.memory_space<vmem>>, %arg5: memref<1x8xf32, #tpu.memory_space<vmem>>, %arg6: memref<16x1024xbf16, #tpu.memory_space<vmem>>, %arg7: memref<1x8x128xf32, #tpu.memory_space<vmem>>, %arg8: memref<16x8xf32, #tpu.memory_space<vmem>>, %arg9: memref<16x128xf32, #tpu.memory_space<vmem>>) attributes {dimension_semantics = [#tpu.dimension_semantics<parallel>, #tpu.dimension_semantics<arbitrary>, #tpu.dimension_semantics<arbitrary>], iteration_bounds = array<i64: 1, 2, 1>, scalar_prefetch = 0 : i64, scratch_operands = 2 : i64, tpu.core_type = #tpu.core_type<tc>, window_params = [{transform_indices = @transform_0, window_bounds = array<i64: 16, 1024>}, {pipeline_mode = #tpu.pipeline_mode<synchronous>, transform_indices = @transform_1, window_bounds = array<i64: 8, 1024>}, {pipeline_mode = #tpu.pipeline_mode<synchronous>, transform_indices = @transform_2, window_bounds = array<i64: 1, 8>}, {transform_indices = @transform_3, window_bounds = array<i64: 16, 1024>}, {transform_indices = @transform_4, window_bounds = array<i64: 1, 8, 128>}]} {
    %c0_i32 = arith.constant 0 : i32
    %0 = arith.cmpi eq, %arg1, %c0_i32 : i32
    %c0_i32_0 = arith.constant 0 : i32
    %1 = arith.cmpi eq, %arg2, %c0_i32_0 : i32
    %2 = arith.andi %0, %1 : i1
    %3 = arith.extui %2 : i1 to i32
    %c0_i32_1 = arith.constant 0 : i32
    %4 = arith.cmpi ne, %3, %c0_i32_1 : i32
    scf.if %4 {
      %cst = arith.constant 0.000000e+00 : f32
      %13 = vector.broadcast %cst : f32 to vector<16x8xf32>
      %c0 = arith.constant 0 : index
      %c0_5 = arith.constant 0 : index
      %14 = vector.load %arg8[%c0, %c0_5] : memref<16x8xf32, #tpu.memory_space<vmem>>, vector<16x8xf32>
      tpu.vector_store %arg8[%c0, %c0_5], %13 {strides = array<i32>} : memref<16x8xf32, #tpu.memory_space<vmem>>, vector<16x8xf32>,
      %cst_6 = arith.constant 0.000000e+00 : f32
      %15 = vector.broadcast %cst_6 : f32 to vector<16x128xf32>
      %c0_7 = arith.constant 0 : index
      %c0_8 = arith.constant 0 : index
      %16 = vector.load %arg9[%c0_7, %c0_8] : memref<16x128xf32, #tpu.memory_space<vmem>>, vector<16x128xf32>
      tpu.vector_store %arg9[%c0_7, %c0_8], %15 {strides = array<i32>} : memref<16x128xf32, #tpu.memory_space<vmem>>, vector<16x128xf32>,
    } else {
    }
    %c1024_i32 = arith.constant 1024 : i32
    %5 = arith.muli %arg2, %c1024_i32 : i32
    %6 = tpu.assume_multiple %5, 1024 : i32
    %c0_i32_2 = arith.constant 0 : i32
    %7 = arith.cmpi eq, %arg1, %c0_i32_2 : i32
    %8 = arith.extui %7 : i1 to i32
    %c0_i32_3 = arith.constant 0 : i32
    %9 = arith.cmpi ne, %8, %c0_i32_3 : i32
    scf.if %9 {
      %c0 = arith.constant 0 : index
      %13 = arith.index_cast %6 : i32 to index
      %14 = vector.load %arg4[%c0, %13] : memref<8x1024xf32, #tpu.memory_space<vmem>>, vector<8x1024xf32>
      %c0_5 = arith.constant 0 : index
      %c0_6 = arith.constant 0 : index
      %15 = vector.load %arg3[%c0_5, %c0_6] : memref<16x1024xbf16, #tpu.memory_space<vmem>>, vector<16x1024xbf16>
      %16 = arith.extf %15 : vector<16x1024xbf16> to vector<16x1024xf32>
      %c0_7 = arith.constant 0 : index
      %c0_8 = arith.constant 0 : index
      %17 = vector.load %arg8[%c0_7, %c0_8] : memref<16x8xf32, #tpu.memory_space<vmem>>, vector<16x8xf32>
      %cst = arith.constant dense<0.000000e+00> : vector<16x8xf32>
      %18 = tpu.matmul %16, %14, %cst {dimension_numbers = #tpu.dot_dimension_numbers<[1], [1], [0], [0], [0, 0, 1, 0], [], []>} : vector<16x1024xf32>, vector<8x1024xf32>, vector<16x8xf32> -> vector<16x8xf32>
      %19 = arith.addf %17, %18 : vector<16x8xf32>
      %c0_9 = arith.constant 0 : index
      %c0_10 = arith.constant 0 : index
      %20 = vector.load %arg8[%c0_9, %c0_10] : memref<16x8xf32, #tpu.memory_space<vmem>>, vector<16x8xf32>
      tpu.vector_store %arg8[%c0_9, %c0_10], %19 {strides = array<i32>} : memref<16x8xf32, #tpu.memory_space<vmem>>, vector<16x8xf32>,
      %c0_i32_11 = arith.constant 0 : i32
      %21 = arith.cmpi eq, %arg2, %c0_i32_11 : i32
      %22 = arith.extui %21 : i1 to i32
      %c0_i32_12 = arith.constant 0 : i32
      %23 = arith.cmpi ne, %22, %c0_i32_12 : i32
      scf.if %23 {
        %c0_13 = arith.constant 0 : index
        %c0_14 = arith.constant 0 : index
        %24 = vector.load %arg8[%c0_13, %c0_14] : memref<16x8xf32, #tpu.memory_space<vmem>>, vector<16x8xf32>
        %c0_15 = arith.constant 0 : index
        %c0_16 = arith.constant 0 : index
        %25 = vector.load %arg5[%c0_15, %c0_16] : memref<1x8xf32, #tpu.memory_space<vmem>>, vector<1x8xf32>
        %26 = vector.broadcast %25 : vector<1x8xf32> to vector<16x8xf32>
        %27 = arith.addf %24, %26 : vector<16x8xf32>
        %cst_17 = arith.constant dense<0xFF800000> : vector<16xf32>
        %28 = vector.multi_reduction <maximumf>, %27, %cst_17 [1] : vector<16x8xf32> to vector<16xf32>
        %29 = vector.shape_cast %28 : vector<16xf32> to vector<16x1xf32>
        %30 = vector.broadcast %29 : vector<16x1xf32> to vector<16x8xf32>
        %31 = arith.subf %27, %30 : vector<16x8xf32>
        %32 = math.exp %31 : vector<16x8xf32>
        %cst_18 = arith.constant dense<0.000000e+00> : vector<16xf32>
        %33 = vector.multi_reduction <add>, %32, %cst_18 [1] : vector<16x8xf32> to vector<16xf32>
        %34 = vector.shape_cast %33 : vector<16xf32> to vector<16x1xf32>
        %35 = vector.broadcast %34 : vector<16x1xf32> to vector<16x8xf32>
        %36 = arith.divf %32, %35 : vector<16x8xf32>
        %cst_19 = arith.constant 8.000000e+00 : f32
        %37 = vector.broadcast %cst_19 : f32 to vector<16x8xf32>
        %38 = arith.mulf %37, %36 : vector<16x8xf32>
        %cst_20 = arith.constant 1.000000e+00 : f32
        %39 = vector.broadcast %cst_20 : f32 to vector<16x8xf32>
        %40 = arith.subf %39, %38 : vector<16x8xf32>
        %c0_21 = arith.constant 0 : index
        %c0_22 = arith.constant 0 : index
        %41 = vector.load %arg8[%c0_21, %c0_22] : memref<16x8xf32, #tpu.memory_space<vmem>>, vector<16x8xf32>
        tpu.vector_store %arg8[%c0_21, %c0_22], %40 {strides = array<i32>} : memref<16x8xf32, #tpu.memory_space<vmem>>, vector<16x8xf32>,
      } else {
      }
    } else {
    }
    %c1_i32 = arith.constant 1 : i32
    %10 = arith.cmpi eq, %arg1, %c1_i32 : i32
    %11 = arith.extui %10 : i1 to i32
    %c0_i32_4 = arith.constant 0 : i32
    %12 = arith.cmpi ne, %11, %c0_i32_4 : i32
    scf.if %12 {
      %c0 = arith.constant 0 : index
      %13 = arith.index_cast %6 : i32 to index
      %14 = vector.load %arg4[%c0, %13] : memref<8x1024xf32, #tpu.memory_space<vmem>>, vector<8x1024xf32>
      %c0_5 = arith.constant 0 : index
      %c0_6 = arith.constant 0 : index
      %15 = vector.load %arg8[%c0_5, %c0_6] : memref<16x8xf32, #tpu.memory_space<vmem>>, vector<16x8xf32>
      %cst = arith.constant dense<0.000000e+00> : vector<16x1024xf32>
      %16 = tpu.matmul %15, %14, %cst {dimension_numbers = #tpu.dot_dimension_numbers<[1], [0], [0], [1], [0, 0, 1, 1], [], []>} : vector<16x8xf32>, vector<8x1024xf32>, vector<16x1024xf32> -> vector<16x1024xf32>
      %c0_7 = arith.constant 0 : index
      %c0_8 = arith.constant 0 : index
      %17 = vector.load %arg6[%c0_7, %c0_8] : memref<16x1024xbf16, #tpu.memory_space<vmem>>, vector<16x1024xbf16>
      %18 = arith.extf %17 : vector<16x1024xbf16> to vector<16x1024xf32>
      %19 = arith.mulf %18, %16 : vector<16x1024xf32>
      %20 = arith.mulf %19, %19 : vector<16x1024xf32>
      %c0_9 = arith.constant 0 : index
      %c0_10 = arith.constant 0 : index
      %21 = vector.load %arg9[%c0_9, %c0_10] : memref<16x128xf32, #tpu.memory_space<vmem>>, vector<16x128xf32>
      %22 = vector.extract_strided_slice %20 {offsets = [0, 0], sizes = [16, 128], strides = [1, 1]} : vector<16x1024xf32> to vector<16x128xf32>
      %23 = arith.addf %21, %22 : vector<16x128xf32>
      %24 = vector.extract_strided_slice %20 {offsets = [0, 128], sizes = [16, 128], strides = [1, 1]} : vector<16x1024xf32> to vector<16x128xf32>
      %25 = arith.addf %23, %24 : vector<16x128xf32>
      %26 = vector.extract_strided_slice %20 {offsets = [0, 256], sizes = [16, 128], strides = [1, 1]} : vector<16x1024xf32> to vector<16x128xf32>
      %27 = arith.addf %25, %26 : vector<16x128xf32>
      %28 = vector.extract_strided_slice %20 {offsets = [0, 384], sizes = [16, 128], strides = [1, 1]} : vector<16x1024xf32> to vector<16x128xf32>
      %29 = arith.addf %27, %28 : vector<16x128xf32>
      %30 = vector.extract_strided_slice %20 {offsets = [0, 512], sizes = [16, 128], strides = [1, 1]} : vector<16x1024xf32> to vector<16x128xf32>
      %31 = arith.addf %29, %30 : vector<16x128xf32>
      %32 = vector.extract_strided_slice %20 {offsets = [0, 640], sizes = [16, 128], strides = [1, 1]} : vector<16x1024xf32> to vector<16x128xf32>
      %33 = arith.addf %31, %32 : vector<16x128xf32>
      %34 = vector.extract_strided_slice %20 {offsets = [0, 768], sizes = [16, 128], strides = [1, 1]} : vector<16x1024xf32> to vector<16x128xf32>
      %35 = arith.addf %33, %34 : vector<16x128xf32>
      %36 = vector.extract_strided_slice %20 {offsets = [0, 896], sizes = [16, 128], strides = [1, 1]} : vector<16x1024xf32> to vector<16x128xf32>
      %37 = arith.addf %35, %36 : vector<16x128xf32>
      %c0_11 = arith.constant 0 : index
      %c0_12 = arith.constant 0 : index
      %38 = vector.load %arg9[%c0_11, %c0_12] : memref<16x128xf32, #tpu.memory_space<vmem>>, vector<16x128xf32>
      tpu.vector_store %arg9[%c0_11, %c0_12], %37 {strides = array<i32>} : memref<16x128xf32, #tpu.memory_space<vmem>>, vector<16x128xf32>,
      %c0_i32_13 = arith.constant 0 : i32
      %39 = arith.cmpi eq, %arg2, %c0_i32_13 : i32
      %40 = arith.extui %39 : i1 to i32
      %c0_i32_14 = arith.constant 0 : i32
      %41 = arith.cmpi ne, %40, %c0_i32_14 : i32
      scf.if %41 {
        %c0_15 = arith.constant 0 : index
        %c0_16 = arith.constant 0 : index
        %42 = vector.load %arg9[%c0_15, %c0_16] : memref<16x128xf32, #tpu.memory_space<vmem>>, vector<16x128xf32>
        %43 = vector.shape_cast %42 : vector<16x128xf32> to vector<2x8x128xf32>
        %cst_17 = arith.constant dense<0.000000e+00> : vector<8x128xf32>
        %44 = vector.multi_reduction <add>, %43, %cst_17 [0] : vector<2x8x128xf32> to vector<8x128xf32>
        %45 = vector.shape_cast %44 : vector<8x128xf32> to vector<1x8x128xf32>
        %c0_18 = arith.constant 0 : index
        %c0_19 = arith.constant 0 : index
        %c0_20 = arith.constant 0 : index
        %46 = vector.load %arg7[%c0_18, %c0_19, %c0_20] : memref<1x8x128xf32, #tpu.memory_space<vmem>>, vector<1x8x128xf32>
        tpu.vector_store %arg7[%c0_18, %c0_19, %c0_20], %45 {strides = array<i32>} : memref<1x8x128xf32, #tpu.memory_space<vmem>>, vector<1x8x128xf32>,
      } else {
      }
    } else {
    }
    return
  }
  func.func @transform_0(%arg0: i32, %arg1: i32, %arg2: i32) -> (i32, i32) {
    %c1_i32 = arith.constant 1 : i32
    %0 = arith.subi %c1_i32, %arg1 : i32
    %1 = arith.muli %arg2, %0 : i32
    %c0_i32 = arith.constant 0 : i32
    %2 = arith.muli %c0_i32, %arg1 : i32
    %3 = arith.addi %1, %2 : i32
    %c0_i32_0 = arith.constant 0 : i32
    return %arg0, %3 : i32, i32
  }
  func.func @transform_1(%arg0: i32, %arg1: i32, %arg2: i32) -> (i32, i32) {
    %c0_i32 = arith.constant 0 : i32
    %c0_i32_0 = arith.constant 0 : i32
    %c0_i32_1 = arith.constant 0 : i32
    return %c0_i32, %c0_i32_0 : i32, i32
  }
  func.func @transform_2(%arg0: i32, %arg1: i32, %arg2: i32) -> (i32, i32) {
    %c0_i32 = arith.constant 0 : i32
    %c0_i32_0 = arith.constant 0 : i32
    %c0_i32_1 = arith.constant 0 : i32
    return %c0_i32, %c0_i32_0 : i32, i32
  }
  func.func @transform_3(%arg0: i32, %arg1: i32, %arg2: i32) -> (i32, i32) {
    %0 = arith.muli %arg2, %arg1 : i32
    %c0_i32 = arith.constant 0 : i32
    return %arg0, %0 : i32, i32
  }
  func.func @transform_4(%arg0: i32, %arg1: i32, %arg2: i32) -> (i32, i32, i32) {
    %c0_i32 = arith.constant 0 : i32
    %c0_i32_0 = arith.constant 0 : i32
    %c0_i32_1 = arith.constant 0 : i32
    return %arg0, %c0_i32, %c0_i32_0 : i32, i32, i32
  }
}

</mosaic_0001>

<bundles_post_ra>
// kernel: tpu_custom_call.1
= control target key start
LH: loop header
LB: loop body
LE: loop exit
PB: predicated region body
PF: predicated region fallthrough
CT: control target
= control target key end

     0   :  { %9 = vsyncpa [#allocation5], 0  ;;  %s1438_s0 = inlined_call_operand.hbm [shape: bf16[16,1024], index: 0, kind: input, shape index: {}]   ;;  %s1439_s1 = inlined_call_operand.hbm [shape: f32[8,1024], index: 1, kind: input, shape index: {}]   ;;  %s1440_s2 = inlined_call_operand.vmem [shape: f32[1,8], index: 2, kind: input, shape index: {}]   ;;  %s1441_s3 = inlined_call_operand.hbm [shape: bf16[16,1024], index: 3, kind: input, shape index: {}]   ;;  %s1442_s4 = inlined_call_operand.hbm [shape: f32[1,8,128], index: 4, kind: output, shape index: {}]  }
   0x1   :  { %11 = vsyncpa [#allocation5 + $0x1], 0 }
   0x2   :  { %12 = vsyncpa [#allocation8], 0 }
   0x3   :  { %13 = vsyncpa [#allocation6], 0  ;;  %s1324_s15 = smov 0   ;;  %s1326_s16 = smov 0  }
   0x4   :  { %s1328_s17 = smov 0  }
   0x5 LB: > { %s216_s20 = sshll.u32 %s1438_s0, 4  ;;  %p1086_p0 = scmp.lt.s32.totalorder %s1290_s17, 2  ;;  %s1290_s17 = sphi %s1328_s17, %s19_s17   ;;  %s1286_s16 = sphi %s1326_s16, %s1446_s16   ;;  %s1282_s15 = sphi %s1324_s15, %s1445_s15   ;;  %s217_s20 = int_to_ptr.hbm [resolvable:$true] %s216_s20 }
   0x6   : > { %p1087_p1 = scmp.eq.s32.totalorder %s1290_s17, 0  ;;  %s201_s21 = sand.u32 1, %s1290_s17  }
   0x7   : > { %s1292_s22 = smov [#allocation4]   ;;  %s1349_s25 = scalar_lea.sflag [#allocation5], %s201_s21 }
   0x8   : > { %s218_s23 = sshll.u32 %s1292_s22, 4  ;;  %p1345_p2 = pnand %p1087_p1, %p1086_p0  ;;  %s219_s23 = int_to_ptr.vmem [resolvable:$true] %s218_s23 }
   0x9   : > { %s1293_s26 = smov 512   ;;  %s1294_s27 = smov 32  }
   0xa   : > { %1081 = dma.hbm_to_vmem [thread:$0]  (!%p1345_p2), %s217_s20, 1024, %s219_s23, %s1349_s25, %s1293_s26, %s1293_s26, %s1294_s27  }
   0xb   : > { %s1355_s28 = sadd.s32 4294967295, %s1290_s17   ;;  %s34_s29 = sadd.s32 1, %s1286_s16 }
   0xc   : > { %p1025_p3 = scmp.ge.s32.totalorder %s1290_s17, 1  ;;  %p36_p4 = scmp.ge.s32.totalorder %s34_s29, 2 }
   0xd   : > { %p173_p5 = scmp.lt.s32.totalorder %s1290_s17, 3  ;;  %p1085_p6 = scmp.eq.s32.totalorder %s1355_s28, 0 }
   0xe   : > { %s1448_s29 = smov (%p36_p4, %s34_s29), 0  ;;  %s185_s7 = sshll.u32 %s1439_s1, 4  ;;  %s186_s7 = int_to_ptr.hbm [resolvable:$true] %s185_s7 }
   0xf   : > { %p1363_p7 = pnand %p1025_p3, %p173_p5  ;;  %s1295_s8 = smov [#allocation7]  }
  0x10   : > { %s187_s9 = sshll.u32 %s1295_s8, 4  ;;  %s242_s12 = sshll.u32 %s1441_s3, 4  ;;  %s188_s9 = int_to_ptr.vmem [resolvable:$true] %s187_s9  ;;  %s243_s12 = int_to_ptr.hbm [resolvable:$true] %s242_s12 }
  0x11   : > { %p1074_p8 = pneg %p1363_p7  ;;  %s1296_s13 = smov [#allocation9]  }
  0x12   : > { %s244_s14 = sshll.u32 %s1296_s13, 4  ;;  %256 = sbr.rel (%p1363_p7) target bundleno = 670 (0x29e), region = 36  ;;  %s245_s14 = int_to_ptr.vmem [resolvable:$true] %s244_s14 }
  0x13   : > { %p1075_p9 = pnand %p1085_p6, %p1074_p8  ;;  %s258_s18 = sand.u32 (!%p1363_p7), 1, %s1355_s28  }
  0x14   : > { %1084 = dma.hbm_to_vmem [thread:$0]  (!%p1345_p2), %s243_s12, 1024, %s245_s14, %s1349_s25, %s1293_s26, %s1293_s26, %s1294_s27  }
  0x15   : > { %1077 = dma.hbm_to_vmem [thread:$0]  (!%p1075_p9), %s186_s7, 1024, %s188_s9, [#allocation8]  }
  0x16   : > { %s259_s19 = scalar_lea.sflag (!%p1363_p7), [#allocation5], %s258_s18 }
  0x17   : > { %1265 = dma.done.wait (%p1085_p6), %s259_s19, 1024  }
  0x18   : > { %1267 = vsyncadd (%p1085_p6), %s259_s19, 4294966272 }
  0x19   : > { %1269 = dma.done.wait (%p1085_p6), [#allocation8], 1024  }
  0x1a   : > { %1271 = vsyncadd (%p1085_p6), [#allocation8], 4294966272 }
  0x1b   : > { %1273 = dma.done.wait (%p1085_p6), %s259_s19, 1024  }
  0x1c   : > { %1275 = vsyncadd (%p1085_p6), %s259_s19, 4294966272  ;;  %p310_p10 = scmp.eq.s32.totalorder %s1282_s15, 0 }
  0x1d   : > { %vm316_vm0 = vcmask (%p310_p10), 64512   ;;  %v1297_v0 = vmov (%p310_p10), 0.0  }
  0x1e   : > { %315 = sbr.rel (!%p310_p10) target bundleno = 35 (0x23), region = 52  ;;  %317 = vst.msk [vmem:[#allocation2] sm:$0xff] (%p310_p10), %vm316_vm0, %v1297_v0 }
  0x1f   : > { %318 = vst.msk [vmem:[#allocation2 + $0x8] sm:$0xff] (%p310_p10), %vm316_vm0, %v1297_v0 }
  0x20   : > { %319 = vst [vmem:[#allocation3] sm:$0xff] (%p310_p10), %v1297_v0 }
  0x21   : > { %320 = vst [vmem:[#allocation3 + $0x8] sm:$0xff] (%p310_p10), %v1297_v0 }
  0x23 PF: > { %p1035_p11 = scmp.ne.s32.totalorder %s1282_s15, 0 }
  0x25   : > { %324 = sbr.rel (%p1035_p11) target bundleno = 487 (0x1e7), region = 56 }
  0x2a   : > { %v329_v1 = vld [vmem:[#allocation7] sm:$0xff]  ;;  %v331_v2 = vld [vmem:[#allocation7 + $0x10] sm:$0xff]  ;;  %v330_v3 = vld [vmem:[#allocation7 + $0x8] sm:$0xff]  ;;  %vm549_vm1 = vcmask 64512  }
  0x2b   : > { %378 = vmatpush.xpose.msra.mxu0 %v329_v1  ;;  %424 = vmatpush.xpose.msra.mxu2 %v331_v2  ;;  %v332_v4 = vld [vmem:[#allocation7 + $0x18] sm:$0xff]  ;;  %v337_v5 = vld [vmem:[#allocation4] sm:$0xff]  ;;  %v338_v6 = vld [vmem:[#allocation4 + $0x8] sm:$0xff] }
  0x2c   : > { %401 = vmatpush.xpose.msra.mxu1 %v330_v3  ;;  %447 = vmatpush.xpose.msra.mxu3 %v332_v4  ;;  %v345_v7 = vunpack.c.l.bf16 %v337_v5  ;;  %v347_v8 = vunpack.c.l.bf16 %v338_v6  ;;  %v335_v9 = vld [vmem:[#allocation7 + $0x30] sm:$0xff]  ;;  %v346_v10 = vunpack.c.h.bf16 %v337_v5  ;;  %v348_v11 = vunpack.c.h.bf16 %v338_v6  ;;  %v333_v12 = vld [vmem:[#allocation7 + $0x20] sm:$0xff]  ;;  %v336_v13 = vld [vmem:[#allocation7 + $0x38] sm:$0xff] }
  0x2d   : > { %v334_v14 = vld [vmem:[#allocation7 + $0x28] sm:$0xff]  ;;  %v341_v15 = vld [vmem:[#allocation4 + $0x20] sm:$0xff]  ;;  %v339_v21 = vld [vmem:[#allocation4 + $0x10] sm:$0xff] }
  0x2e   : > { %379 = vmatmul.f32.vlgmr.msra.gmra.mxu0 %v345_v7  ;;  %425 = vmatmul.f32.vlgmr.msra.gmra.mxu2 %v347_v8  ;;  %v342_v16 = vld [vmem:[#allocation4 + $0x28] sm:$0xff]  ;;  %v353_v17 = vunpack.c.l.bf16 %v341_v15  ;;  %v354_v19 = vunpack.c.h.bf16 %v341_v15  ;;  %v340_v22 = vld [vmem:[#allocation4 + $0x18] sm:$0xff]  ;;  %v349_v23 = vunpack.c.l.bf16 %v339_v21  ;;  %v350_v25 = vunpack.c.h.bf16 %v339_v21  ;;  %v343_v27 = vld [vmem:[#allocation4 + $0x30] sm:$0xff] }
  0x2f   : > { %516 = vmatpush.xpose.msrb.mxu2 %v335_v9  ;;  %470 = vmatpush.xpose.msrb.mxu0 %v333_v12  ;;  %v355_v18 = vunpack.c.l.bf16 %v342_v16  ;;  %v356_v20 = vunpack.c.h.bf16 %v342_v16  ;;  %v351_v24 = vunpack.c.l.bf16 %v340_v22  ;;  %v352_v26 = vunpack.c.h.bf16 %v340_v22  ;;  %v344_v28 = vld [vmem:[#allocation4 + $0x38] sm:$0xff]  ;;  %v361_v55 = vld [vmem:[#allocation2] sm:$0xff]  ;;  %v362_v0 = vld [vmem:[#allocation2 + $0x8] sm:$0xff] }
  0x30   : > { %402 = vmatmul.f32.vlgmr.msra.gmra.mxu1 %v346_v10  ;;  %448 = vmatmul.f32.vlgmr.msra.gmra.mxu3 %v348_v11  ;;  %v357_v29 = vunpack.c.l.bf16 %v343_v27  ;;  %v359_v30 = vunpack.c.l.bf16 %v344_v28  ;;  %v358_v31 = vunpack.c.h.bf16 %v343_v27  ;;  %v360_v32 = vunpack.c.h.bf16 %v344_v28  ;;  %v1125_v2 = vld [vmem:[%s1440_s2] ss:$0 sm:$0xff] }
  0x31   : > { %539 = vmatpush.xpose.msrb.mxu3 %v336_v13  ;;  %493 = vmatpush.xpose.msrb.mxu1 %v334_v14 }
  0x36   : > { %382 = vmatmul.f32.gmra.mxu0 %v353_v17  ;;  %428 = vmatmul.f32.gmra.mxu2 %v355_v18 }
  0x38   : > { %405 = vmatmul.f32.gmra.mxu1 %v354_v19  ;;  %451 = vmatmul.f32.gmra.mxu3 %v356_v20 }
  0x3e   : > { %471 = vmatmul.f32.vlgmr.msrb.gmra.mxu0 %v349_v23  ;;  %517 = vmatmul.f32.vlgmr.msrb.gmra.mxu2 %v351_v24 }
  0x40   : > { %494 = vmatmul.f32.vlgmr.msrb.gmra.mxu1 %v350_v25  ;;  %540 = vmatmul.f32.vlgmr.msrb.gmra.mxu3 %v352_v26 }
  0x46   : > { %474 = vmatmul.f32.gmra.mxu0 %v357_v29  ;;  %520 = vmatmul.f32.gmra.mxu2 %v359_v30 }
  0x48   : > { %497 = vmatmul.f32.gmra.mxu1 %v358_v31  ;;  %543 = vmatmul.f32.gmra.mxu3 %v360_v32 }
  0xab   : > { %v380_v33 = vpop.f32.mrf.mxu0 }
  0xad   : > { %v403_v34 = vpop.f32.mrf.mxu1 }
  0xae   : > { %v404_v38 = vadd.f32 %v403_v34, %v380_v33 }
  0xb1   : > { %v426_v35 = vpop.f32.mrf.mxu2 }
  0xb2   : > { %v427_v40 = vadd.f32 %v426_v35, %v404_v38 }
  0xb3   : > { %v449_v36 = vpop.f32.mrf.mxu3  ;;  %v383_v37 = vpop.f32.mrf.mxu0 }
  0xb4   : > { %v450_v42 = vadd.f32 %v449_v36, %v427_v40 }
  0xb5   : > { %v406_v39 = vpop.f32.mrf.mxu1 }
  0xb6   : > { %v407_v45 = vadd.f32 %v406_v39, %v383_v37 }
  0xb9   : > { %v429_v41 = vpop.f32.mrf.mxu2 }
  0xba   : > { %v430_v48 = vadd.f32 %v429_v41, %v407_v45 }
  0xbb   : > { %v452_v43 = vpop.f32.mrf.mxu3  ;;  %v472_v44 = vpop.f32.mrf.mxu0 }
  0xbc   : > { %v473_v46 = vadd.f32 %v472_v44, %v450_v42  ;;  %v453_v51 = vadd.f32 %v452_v43, %v430_v48 }
  0xbd   : > { %v495_v47 = vpop.f32.mrf.mxu1 }
  0xbe   : > { %v496_v49 = vadd.f32 %v495_v47, %v473_v46 }
  0xc1   : > { %v518_v50 = vpop.f32.mrf.mxu2 }
  0xc2   : > { %v519_v52 = vadd.f32 %v518_v50, %v496_v49 }
  0xc3   : > { %v541_v53 = vpop.f32.mrf.mxu3  ;;  %v475_v54 = vpop.f32.mrf.mxu0 }
  0xc4   : > { %v476_v56 = vadd.f32 %v475_v54, %v453_v51  ;;  %v542_v57 = vadd.f32 %v541_v53, %v519_v52 }
  0xc5   : > { %v498_v58 = vpop.f32.mrf.mxu1 }
  0xc6   : > { %v547_v59 = vadd.f32 %v542_v57, %v361_v55  ;;  %v499_v60 = vadd.f32 %v498_v58, %v476_v56 }
  0xc8   : > { %550 = vst.msk [vmem:[#allocation2] sm:$0xff] %vm549_vm1, %v547_v59 }
  0xc9   : > { %v521_v61 = vpop.f32.mrf.mxu2 }
  0xca   : > { %v522_v62 = vadd.f32 %v521_v61, %v499_v60 }
  0xcb   : > { %v544_v63 = vpop.f32.mrf.mxu3 }
  0xcc   : > { %v545_v1 = vadd.f32 %v544_v63, %v522_v62 }
  0xce   : > { %v548_v3 = vadd.f32 %v545_v1, %v362_v0 }
  0xcf   : > { %v555_v4 = vld [vmem:[#allocation2] sm:$0xff] }
  0xd0   : > { %551 = vst.msk [vmem:[#allocation2 + $0x8] sm:$0xff] %vm549_vm1, %v548_v3  ;;  %v561_v5 = vadd.f32 %v1125_v2, %v555_v4 }
  0xd2   : > { %v563_v6 = vsel %vm549_vm1, %v561_v5, -inf }
  0xd3   : > { %564 = vmax.xlane.f32.xlu0 %v563_v6 }
  0xd7   : > { %v556_v7 = vld [vmem:[#allocation2 + $0x8] sm:$0xff] }
  0xd8   : > { %v562_v8 = vadd.f32 %v1125_v2, %v556_v7 }
  0xda   : > { %v566_v9 = vsel %vm549_vm1, %v562_v8, -inf }
  0xdb   : > { %567 = vmax.xlane.f32.xlu0 %v566_v9 }
 0x146   : > { %v565_v10 = vpop.xlane.xlu0 %564 }
 0x147   : > { %v569_v11 = vsub.f32 %v561_v5, %v565_v10 }
 0x149   : > { %v571_v12 = vmul.f32 1.442695, %v569_v11 }
 0x14b   : > { %1126 = vpow2.f32 %v571_v12 }
 0x14e   : > { %v568_v13 = vpop.xlane.xlu0 %567 }
 0x14f   : > { %v570_v14 = vsub.f32 %v562_v8, %v568_v13 }
 0x151   : > { %v1127_v15 = vpop.eup %1126  ;;  %v573_v16 = vmul.f32 1.442695, %v570_v14 }
 0x152   : > { %v575_v17 = vsel %vm549_vm1, %v1127_v15, 0.0 }
 0x153   : > { %1128 = vpow2.f32 %v573_v16  ;;  %576 = vadd.xlane.f32.xlu1 %v575_v17 }
 0x159   : > { %v1129_v18 = vpop.eup %1128 }
 0x15a   : > { %v578_v19 = vsel %vm549_vm1, %v1129_v18, 0.0 }
 0x15b   : > { %579 = vadd.xlane.f32.xlu1 %v578_v19 }
 0x1c6   : > { %v577_v20 = vpop.xlane.xlu1 %576 }
 0x1c7   : > { %1130 = vrcp.f32 %v577_v20  ;;  %v592_v25 = vand.u32 2147483648, %v577_v20  ;;  %v590_v27 = vand.u32 2147483647, %v577_v20  ;;  %vm586_vm3 = vweird.f32 %v577_v20 }
 0x1c9   : > { %v593_v30 = vor.u32 1.1754944e-38, %v592_v25  ;;  %vm591_vm5 = vcmp.eq.f32.partialorder %v590_v27, 8.507059e+37 }
 0x1cd   : > { %v1131_v21 = vpop.eup %1130 }
 0x1ce   : > { %v582_v22 = vmul.f32 %v1131_v21, %v577_v20  ;;  %v580_v23 = vpop.xlane.xlu1 %579  ;;  %vm587_vm2 = vweird.f32 %v1131_v21 }
 0x1cf   : > { %1132 = vrcp.f32 %v580_v23  ;;  %vm588_vm4 = vmor %vm586_vm3, %vm587_vm2  ;;  %v607_v36 = vand.u32 2147483648, %v580_v23  ;;  %v605_v39 = vand.u32 2147483647, %v580_v23  ;;  %vm601_vm7 = vweird.f32 %v580_v23 }
 0x1d0   : > { %v583_v24 = vsub.f32 1.0, %v582_v22 }
 0x1d1   : > { %v608_v42 = vor.u32 1.1754944e-38, %v607_v36  ;;  %vm606_vm9 = vcmp.eq.f32.partialorder %v605_v39, 8.507059e+37 }
 0x1d2   : > { %v584_v26 = vmul.f32 %v1131_v21, %v583_v24 }
 0x1d4   : > { %v585_v28 = vadd.f32 %v1131_v21, %v584_v26 }
 0x1d5   : > { %v1133_v29 = vpop.eup %1132 }
 0x1d6   : > { %v589_v31 = vsel %vm588_vm4, %v1131_v21, %v585_v28  ;;  %v597_v32 = vmul.f32 %v1133_v29, %v580_v23  ;;  %vm602_vm6 = vweird.f32 %v1133_v29 }
 0x1d7   : > { %v594_v33 = vsel %vm591_vm5, %v593_v30, %v589_v31  ;;  %vm603_vm8 = vmor %vm601_vm7, %vm602_vm6 }
 0x1d8   : > { %v595_v34 = vmul.f32 %v1127_v15, %v594_v33  ;;  %v598_v35 = vsub.f32 1.0, %v597_v32 }
 0x1da   : > { %v611_v37 = vmul.f32 8.0, %v595_v34  ;;  %v599_v38 = vmul.f32 %v1133_v29, %v598_v35 }
 0x1dc   : > { %v613_v40 = vsub.f32 1.0, %v611_v37  ;;  %v600_v41 = vadd.f32 %v1133_v29, %v599_v38 }
 0x1de   : > { %615 = vst.msk [vmem:[#allocation2] sm:$0xff] %vm549_vm1, %v613_v40  ;;  %v604_v43 = vsel %vm603_vm8, %v1133_v29, %v600_v41 }
 0x1df   : > { %v609_v44 = vsel %vm606_vm9, %v608_v42, %v604_v43 }
 0x1e0   : > { %v610_v45 = vmul.f32 %v1129_v18, %v609_v44 }
 0x1e2   : > { %v612_v46 = vmul.f32 8.0, %v610_v45 }
 0x1e4   : > { %v614_v47 = vsub.f32 1.0, %v612_v46 }
 0x1e6   : > { %616 = vst.msk [vmem:[#allocation2 + $0x8] sm:$0xff] %vm549_vm1, %v614_v47 }
 0x1e7 PF: > { %p1036_p12 = scmp.ne.s32.totalorder %s1282_s15, 1 }
 0x1e9   : > { %620 = sbr.rel (%p1036_p12) target bundleno = 664 (0x298), region = 64 }
 0x1ee   : > { %v625_v48 = vld [vmem:[#allocation7] sm:$0xff]  ;;  %v627_v49 = vld [vmem:[#allocation7 + $0x10] sm:$0xff]  ;;  %vm635_vm10 = vcmask 64512   ;;  %v626_v52 = vld [vmem:[#allocation7 + $0x8] sm:$0xff] }
 0x1ef   : > { %v633_v50 = vld [vmem:[#allocation2] sm:$0xff]  ;;  %657 = vmatpush.msra.mxu0 %v625_v48  ;;  %703 = vmatpush.msra.mxu2 %v627_v49  ;;  %v631_v51 = vld [vmem:[#allocation7 + $0x30] sm:$0xff]  ;;  %v628_v53 = vld [vmem:[#allocation7 + $0x18] sm:$0xff] }
 0x1f0   : > { %1037 = vmatmul.msk.f32.vlgmr.msra.gmra.mxu0 %vm635_vm10, %v633_v50  ;;  %1041 = vmatmul.msk.f32.vlgmr.msra.gmra.mxu2 %vm635_vm10, %v633_v50  ;;  %v629_v54 = vld [vmem:[#allocation7 + $0x20] sm:$0xff]  ;;  %v632_v55 = vld [vmem:[#allocation7 + $0x38] sm:$0xff]  ;;  %v630_v56 = vld [vmem:[#allocation7 + $0x28] sm:$0xff] }
 0x1f1   : > { %795 = vmatpush.msrb.mxu2 %v631_v51  ;;  %680 = vmatpush.msra.mxu1 %v626_v52  ;;  %v634_v57 = vld [vmem:[#allocation2 + $0x8] sm:$0xff]  ;;  %v826_v58 = vld [vmem:[#allocation9] sm:$0xff]  ;;  %v882_v3 = vld [vmem:[#allocation3] sm:$0xff] }
 0x1f2   : > { %726 = vmatpush.msra.mxu3 %v628_v53  ;;  %1039 = vmatmul.msk.f32.vlgmr.msra.gmra.mxu1 %vm635_vm10, %v633_v50  ;;  %v834_v59 = vunpack.c.l.bf16 %v826_v58  ;;  %v835_v60 = vunpack.c.h.bf16 %v826_v58  ;;  %v827_v62 = vld [vmem:[#allocation9 + $0x8] sm:$0xff]  ;;  %v830_v1 = vld [vmem:[#allocation9 + $0x20] sm:$0xff]  ;;  %v828_v21 = vld [vmem:[#allocation9 + $0x10] sm:$0xff] }
 0x1f3   : > { %1043 = vmatmul.msk.f32.vlgmr.msra.gmra.mxu3 %vm635_vm10, %v633_v50  ;;  %749 = vmatpush.msrb.mxu0 %v629_v54  ;;  %v836_v5 = vunpack.c.l.bf16 %v827_v62  ;;  %v842_v6 = vunpack.c.l.bf16 %v830_v1  ;;  %v837_v10 = vunpack.c.h.bf16 %v827_v62  ;;  %v843_v12 = vunpack.c.h.bf16 %v830_v1  ;;  %v831_v14 = vld [vmem:[#allocation9 + $0x28] sm:$0xff]  ;;  %v883_v23 = vld [vmem:[#allocation3 + $0x8] sm:$0xff]  ;;  %v832_v43 = vld [vmem:[#allocation9 + $0x30] sm:$0xff] }
 0x1f4   : > { %818 = vmatpush.msrb.mxu3 %v632_v55  ;;  %772 = vmatpush.msrb.mxu1 %v630_v56  ;;  %v844_v25 = vunpack.c.l.bf16 %v831_v14  ;;  %v838_v26 = vunpack.c.l.bf16 %v828_v21  ;;  %v845_v33 = vunpack.c.h.bf16 %v831_v14  ;;  %v839_v34 = vunpack.c.h.bf16 %v828_v21  ;;  %v829_v35 = vld [vmem:[#allocation9 + $0x18] sm:$0xff] }
 0x1f5   : > { %v840_v42 = vunpack.c.l.bf16 %v829_v35  ;;  %v841_v52 = vunpack.c.h.bf16 %v829_v35  ;;  %v847_v56 = vunpack.c.h.bf16 %v832_v43 }
 0x1f8   : > { %1038 = vmatmul.msk.f32.gmra.mxu0 %vm635_vm10, %v634_v57  ;;  %1042 = vmatmul.msk.f32.gmra.mxu2 %vm635_vm10, %v634_v57 }
 0x1fa   : > { %1040 = vmatmul.msk.f32.gmra.mxu1 %vm635_vm10, %v634_v57 }
 0x1fb   : > { %1044 = vmatmul.msk.f32.gmra.mxu3 %vm635_vm10, %v634_v57 }
 0x200   : > { %1045 = vmatmul.msk.f32.vlgmr.msrb.gmra.mxu0 %vm635_vm10, %v633_v50  ;;  %1049 = vmatmul.msk.f32.vlgmr.msrb.gmra.mxu2 %vm635_vm10, %v633_v50 }
 0x202   : > { %1047 = vmatmul.msk.f32.vlgmr.msrb.gmra.mxu1 %vm635_vm10, %v633_v50 }
 0x203   : > { %1051 = vmatmul.msk.f32.vlgmr.msrb.gmra.mxu3 %vm635_vm10, %v633_v50  ;;  %v846_v50 = vunpack.c.l.bf16 %v832_v43 }
 0x208   : > { %1046 = vmatmul.msk.f32.gmra.mxu0 %vm635_vm10, %v634_v57  ;;  %1050 = vmatmul.msk.f32.gmra.mxu2 %vm635_vm10, %v634_v57 }
 0x20a   : > { %1048 = vmatmul.msk.f32.gmra.mxu1 %vm635_vm10, %v634_v57 }
 0x20b   : > { %1052 = vmatmul.msk.f32.gmra.mxu3 %vm635_vm10, %v634_v57  ;;  %v833_v57 = vld [vmem:[#allocation9 + $0x38] sm:$0xff] }
 0x20c   : > { %v848_v1 = vunpack.c.l.bf16 %v833_v57 }
 0x26d   : > { %v659_v61 = vpop.f32.mrf.mxu0 }
 0x26e   : > { %v850_v63 = vmul.f32 %v834_v59, %v659_v61 }
 0x26f   : > { %v682_v0 = vpop.f32.mrf.mxu1 }
 0x270   : > { %v866_v2 = vmul.f32 %v850_v63, %v850_v63  ;;  %v851_v4 = vmul.f32 %v835_v60, %v682_v0 }
 0x272   : > { %v884_v7 = vadd.f32 %v882_v3, %v866_v2  ;;  %v867_v8 = vmul.f32 %v851_v4, %v851_v4 }
 0x273   : > { %v705_v9 = vpop.f32.mrf.mxu2 }
 0x274   : > { %v852_v11 = vmul.f32 %v836_v5, %v705_v9  ;;  %v886_v17 = vadd.f32 %v884_v7, %v867_v8 }
 0x275   : > { %v662_v13 = vpop.f32.mrf.mxu0 }
 0x276   : > { %v858_v15 = vmul.f32 %v842_v6, %v662_v13  ;;  %v728_v16 = vpop.f32.mrf.mxu3  ;;  %v868_v18 = vmul.f32 %v852_v11, %v852_v11  ;;  %v849_v11 = vunpack.c.h.bf16 %v833_v57 }
 0x277   : > { %v853_v19 = vmul.f32 %v837_v10, %v728_v16  ;;  %v685_v20 = vpop.f32.mrf.mxu1 }
 0x278   : > { %v874_v22 = vmul.f32 %v858_v15, %v858_v15  ;;  %v859_v24 = vmul.f32 %v843_v12, %v685_v20  ;;  %v888_v27 = vadd.f32 %v886_v17, %v868_v18 }
 0x279   : > { %v869_v29 = vmul.f32 %v853_v19, %v853_v19 }
 0x27a   : > { %v885_v28 = vadd.f32 %v883_v23, %v874_v22  ;;  %v875_v30 = vmul.f32 %v859_v24, %v859_v24 }
 0x27b   : > { %v708_v31 = vpop.f32.mrf.mxu2  ;;  %v890_v39 = vadd.f32 %v888_v27, %v869_v29 }
 0x27c   : > { %v860_v32 = vmul.f32 %v844_v25, %v708_v31  ;;  %v887_v40 = vadd.f32 %v885_v28, %v875_v30 }
 0x27d   : > { %v751_v36 = vpop.f32.mrf.mxu0 }
 0x27e   : > { %v731_v37 = vpop.f32.mrf.mxu3  ;;  %v854_v38 = vmul.f32 %v838_v26, %v751_v36  ;;  %v876_v44 = vmul.f32 %v860_v32, %v860_v32 }
 0x27f   : > { %v774_v41 = vpop.f32.mrf.mxu1  ;;  %v861_v45 = vmul.f32 %v845_v33, %v731_v37 }
 0x280   : > { %v870_v46 = vmul.f32 %v854_v38, %v854_v38  ;;  %v855_v47 = vmul.f32 %v839_v34, %v774_v41  ;;  %v889_v53 = vadd.f32 %v887_v40, %v876_v44 }
 0x281   : > { %v877_v54 = vmul.f32 %v861_v45, %v861_v45 }
 0x282   : > { %v892_v48 = vadd.f32 %v890_v39, %v870_v46  ;;  %v871_v49 = vmul.f32 %v855_v47, %v855_v47 }
 0x283   : > { %v797_v51 = vpop.f32.mrf.mxu2  ;;  %v891_v2 = vadd.f32 %v889_v53, %v877_v54 }
 0x284   : > { %v856_v55 = vmul.f32 %v840_v42, %v797_v51  ;;  %v894_v59 = vadd.f32 %v892_v48, %v871_v49 }
 0x285   : > { %v754_v58 = vpop.f32.mrf.mxu0 }
 0x286   : > { %v872_v60 = vmul.f32 %v856_v55, %v856_v55  ;;  %v862_v61 = vmul.f32 %v846_v50, %v754_v58  ;;  %v820_v62 = vpop.f32.mrf.mxu3 }
 0x287   : > { %v857_v63 = vmul.f32 %v841_v52, %v820_v62  ;;  %v777_v0 = vpop.f32.mrf.mxu1 }
 0x288   : > { %v896_v3 = vadd.f32 %v894_v59, %v872_v60  ;;  %v878_v4 = vmul.f32 %v862_v61, %v862_v61  ;;  %v863_v5 = vmul.f32 %v847_v56, %v777_v0 }
 0x289   : > { %v873_v6 = vmul.f32 %v857_v63, %v857_v63 }
 0x28a   : > { %v893_v7 = vadd.f32 %v891_v2, %v878_v4  ;;  %v879_v8 = vmul.f32 %v863_v5, %v863_v5 }
 0x28b   : > { %v898_v9 = vadd.f32 %v896_v3, %v873_v6  ;;  %v800_v10 = vpop.f32.mrf.mxu2 }
 0x28c   : > { %v864_v12 = vmul.f32 %v848_v1, %v800_v10  ;;  %v895_v13 = vadd.f32 %v893_v7, %v879_v8 }
 0x28d   : > { %900 = vst [vmem:[#allocation3] sm:$0xff] %v898_v9 }
 0x28e   : > { %v880_v14 = vmul.f32 %v864_v12, %v864_v12  ;;  %v823_v15 = vpop.f32.mrf.mxu3 }
 0x28f   : > { %v865_v16 = vmul.f32 %v849_v11, %v823_v15 }
 0x290   : > { %v897_v17 = vadd.f32 %v895_v13, %v880_v14 }
 0x291   : > { %v881_v18 = vmul.f32 %v865_v16, %v865_v16 }
 0x293   : > { %v899_v19 = vadd.f32 %v897_v17, %v881_v18 }
 0x295   : > { %901 = vst [vmem:[#allocation3 + $0x8] sm:$0xff] %v899_v19  ;;  %v907_v20 = vadd.f32 %v899_v19, %v898_v9 }
 0x297   : > { %908 = vst [vmem:[#allocation10] sm:$0xff] %v907_v20 }
 0x298 PF: > { %p1092_p13 = scmp.eq.s32.totalorder %s1355_s28, 1  ;;  %s919_s23 = sshll.u32 %s1442_s4, 4  ;;  %s920_s23 = int_to_ptr.hbm [resolvable:$true] %s919_s23 }
 0x299   : > { %s1298_s24 = smov [#allocation10]  }
 0x29a   : > { %s917_s25 = sshll.u32 %s1298_s24, 4  ;;  %s918_s25 = int_to_ptr.vmem [resolvable:$true] %s917_s25 }
 0x29b   : > { %1071 = dma.vmem_to_hbm [thread:$0]  (%p1092_p13), %s918_s25, 128, %s920_s23, [#allocation6]  }
 0x29c   : > { %1277 = dma.done.wait (%p1092_p13), [#allocation6], 128  }
 0x29d   : > { %1279 = vsyncadd (%p1092_p13), [#allocation6], 4294967168 }
 0x29e PF: > { %s19_s17 = sadd.s32 1, %s1290_s17   ;;  %s1445_s15 = smov %s1286_s16 }
 0x29f   : > { %p16_p0 = scmp.ge.s32.totalorder %s19_s17, 4   ;;  %s1446_s16 = smov %s1448_s29 }
 0x2a1   :  { %18 = sbr.rel (!%p16_p0) target bundleno = 5 (0x5), region = 111 }
 0x2a6   :  { %933 = vsyncpa [#allocation5], 1 }
 0x2a7   :  { %935 = vsyncpa [#allocation5 + $0x1], 1 }
 0x2a8   :  { %936 = vsyncpa [#allocation8], 1 }
 0x2a9   :  { %937 = vsyncpa [#allocation6], 1 }
 0x2aa   :  { %939 = vsyncpa [#allocation6 + $0x1], 1 }

</bundles_post_ra>
